<compile_context>
chip_gen: v7x
topology: tpu7x:2x2x1
jax: 0.10.0
libtpu: 0.0.40
codegen_flags: <defaults>
</compile_context>

<pallas_src>
import jax
import jax.numpy as jnp
from jax.experimental import pallas as pl
from jax.experimental.pallas import tpu as pltpu

# ---- small synthetic sizes consistent with the module's constructor args ----
B = 2          # batch
B_PAD = 8      # batch padded to one full sublane tile inside the kernel
T = 8          # sequence length
VOCAB = 100    # vocab_size
E = 64         # embedding_size
H = 32         # hidden_size  (bi-LSTM -> 2H = 64 features into fc1)
FC1 = 16       # fc1 out
OUT = 1        # target_size


def bilstm_head_kernel(ids_ref,     # SMEM (B, T) int32 token ids
                       emb_ref,     # VMEM (VOCAB, E) embedding table
                       wih_ref,     # VMEM (E, 8H)  concat [W_ih_fwd | W_ih_bwd] (pre-transposed)
                       whh_ref,     # VMEM (H, 4H)  forward recurrent weights (pre-transposed)
                       misc_ref,    # VMEM (8, 8H)  packed: row0=b_cat, row1[:2H]=w_head, row2[0]=b_head
                       out_ref,     # VMEM (B, OUT) sigmoid scores for the last timestep
                       x_ref):      # VMEM scratch (T*B_PAD, E) gathered time-major embeddings
    # ---- in-kernel embedding gather into a time-major, batch-padded buffer ----
    x_ref[...] = jnp.zeros_like(x_ref)          # pad-batch rows stay exactly zero
    for t in range(T):                          # 16 dynamic row loads, static dest rows
        for b in range(B):
            idx = ids_ref[b, t]                 # scalar read from SMEM
            x_ref[pl.ds(t * B_PAD + b, 1), :] = emb_ref[pl.ds(idx, 1), :]

    misc = misc_ref[...]                        # (8, 8H) packed small operands
    bias = misc[0:1, :]                         # (1, 8H) = [b_fwd | b_bwd]

    # ---- hoisted input projection for BOTH directions: one matmul + bias ----
    xproj = (jnp.dot(x_ref[...], wih_ref[...],
                     preferred_element_type=jnp.float32)
             + bias)                            # (T*B_PAD, 8H)

    # Whole-vreg gate activation with a SINGLE tanh pass per call:
    #   non-g lanes: sigmoid(x) = 0.5 * (1 + tanh(x/2));  g lanes: tanh(x).
    lane = jax.lax.broadcasted_iota(jnp.int32, (B_PAD, 4 * H), 1)
    g_mask = (lane >= 2 * H) & (lane < 3 * H)

    def activate(gates):                        # (B_PAD, 4H) -> (B_PAD, 4H)
        y = jnp.tanh(jnp.where(g_mask, gates, 0.5 * gates))
        return jnp.where(g_mask, y, 0.5 * (y + 1.0))

    def cell_update(act, c_prev):               # split only for tiny elementwise update
        i = act[:, 0 * H:1 * H]
        f = act[:, 1 * H:2 * H]
        g = act[:, 2 * H:3 * H]
        o = act[:, 3 * H:4 * H]
        c_new = f * c_prev + i * g
        h_new = o * jnp.tanh(c_new)
        return h_new, c_new

    # ---- forward direction: fully unrolled, whh loaded once ----
    whh = whh_ref[...]                          # (H, 4H) hoisted above the loop
    h_f = jnp.zeros((B_PAD, H), jnp.float32)
    c_f = jnp.zeros((B_PAD, H), jnp.float32)
    for t in range(T):
        gates = (xproj[t * B_PAD:(t + 1) * B_PAD, 0:4 * H]     # one (8,128) tile
                 + jnp.dot(h_f, whh, preferred_element_type=jnp.float32))
        h_f, c_f = cell_update(activate(gates), c_f)

    # ---- backward direction: out[:, -1] only consumes its FIRST step from a
    # zero state, so the recurrent term is exactly zero (bias still applied
    # via b_cat). ----
    act_b = activate(xproj[(T - 1) * B_PAD:T * B_PAD, 4 * H:8 * H])
    h_b, _ = cell_update(act_b, jnp.zeros((B_PAD, H), jnp.float32))

    # ---- folded fc1->fc2 head: logit = [h_f|h_b] @ (fc1_w@fc2_w) + b_head ----
    w = misc[1:2, 0:2 * H]                      # (1, 2H)
    b_head = misc[2:3, 0:1]                     # (1, 1)
    logit = (jnp.sum(h_f * w[:, 0:H], axis=-1, keepdims=True)
             + jnp.sum(h_b * w[:, H:2 * H], axis=-1, keepdims=True)
             + b_head)                          # (B_PAD, 1)
    out_ref[...] = jax.nn.sigmoid(logit)[0:B, :]


def prepare_params(params):
    """One-time parameter packing / folding (hoisted OUT of the per-call path)."""
    wih_cat = jnp.concatenate([params["wih_f"], params["wih_b"]], axis=1)    # (E, 8H)
    b_cat = jnp.concatenate([params["b_f"], params["b_b"]], axis=1)          # (1, 8H)
    # fc1 -> fc2 fold (no nonlinearity between them in the PyTorch module).
    w_head = (params["fc1_w"] @ params["fc2_w"]).T                           # (1, 2H)
    b_head = params["fc1_b"] @ params["fc2_w"] + params["fc2_b"]             # (1, 1)
    # Pack the three tiny operands into ONE pre-padded (8, 8H) slab.
    misc = jnp.zeros((8, 8 * H), jnp.float32)
    misc = misc.at[0:1, :].set(b_cat)
    misc = misc.at[1:2, 0:2 * H].set(w_head)
    misc = misc.at[2:3, 0:1].set(b_head)
    return {
        "embedding": params["embedding"].astype(jnp.float32),
        "wih_cat": wih_cat,
        "whh_f": params["whh_f"],
        "misc": misc,
    }


@jax.jit
def net_forward(token_ids, prepared):
    """Replicates Net.forward(inputs): returns (B, 1) sigmoid scores (= out[:, -1]).

    Hot path = exactly one pallas_call (embedding gather happens in-kernel).
    """
    vmem = pl.BlockSpec(memory_space=pltpu.MemorySpace.VMEM)
    smem = pl.BlockSpec(memory_space=pltpu.MemorySpace.SMEM)
    return pl.pallas_call(
        bilstm_head_kernel,
        out_shape=jax.ShapeDtypeStruct((B, OUT), jnp.float32),
        in_specs=[smem, vmem, vmem, vmem, vmem],
        out_specs=vmem,
        scratch_shapes=[pltpu.VMEM((T * B_PAD, E), jnp.float32)],
    )(token_ids, prepared["embedding"], prepared["wih_cat"],
      prepared["whh_f"], prepared["misc"])


def reference_forward(token_ids, params):
    """Pure-JAX reference of the full module forward (for correctness check)."""
    embeds = params["embedding"][token_ids]                   # (B, T, E)
    xs = jnp.transpose(embeds, (1, 0, 2))                     # (T, B, E)

    def run_dir(wih, whh, b, reverse):
        h = jnp.zeros((B, H), jnp.float32)
        c = jnp.zeros((B, H), jnp.float32)
        hs = [None] * T
        order = range(T - 1, -1, -1) if reverse else range(T)
        for t in order:
            g = xs[t] @ wih + h @ whh + b
            i = jax.nn.sigmoid(g[:, 0:H])
            f = jax.nn.sigmoid(g[:, H:2 * H])
            gg = jnp.tanh(g[:, 2 * H:3 * H])
            o = jax.nn.sigmoid(g[:, 3 * H:4 * H])
            c = f * c + i * gg
            h = o * jnp.tanh(c)
            hs[t] = h
        return jnp.stack(hs)                                  # (T, B, H)

    hf = run_dir(params["wih_f"], params["whh_f"], params["b_f"], False)
    hb = run_dir(params["wih_b"], params["whh_b"], params["b_b"], True)
    hcat = jnp.concatenate([hf, hb], axis=-1)                 # (T, B, 2H)
    y = hcat.reshape(T * B, 2 * H) @ params["fc1_w"] + params["fc1_b"]
    y = y @ params["fc2_w"] + params["fc2_b"]
    y = jax.nn.sigmoid(y).reshape(T, B)
    # view(B, T, 1) then [:, -1]  ->  (B, 1)
    return jnp.transpose(y)[:, -1:]


def init_params(key):
    """Deterministic parameter init (synthetic; shapes match the nn.Module)."""
    keys = jax.random.split(key, 16)
    s = 0.1

    def rnd(k, shape):
        return (s * jax.random.normal(k, shape)).astype(jnp.float32)

    return {
        "embedding": rnd(keys[0], (VOCAB, E)),
        # LSTM weights, pre-transposed for x @ W; biases = b_ih + b_hh combined.
        "wih_f": rnd(keys[1], (E, 4 * H)),
        "whh_f": rnd(keys[2], (H, 4 * H)),
        "b_f":   rnd(keys[3], (1, 4 * H)),
        "wih_b": rnd(keys[4], (E, 4 * H)),
        "whh_b": rnd(keys[5], (H, 4 * H)),
        "b_b":   rnd(keys[6], (1, 4 * H)),
        "fc1_w": rnd(keys[7], (2 * H, FC1)),
        "fc1_b": rnd(keys[8], (1, FC1)),
        "fc2_w": rnd(keys[9], (FC1, OUT)),
        "fc2_b": rnd(keys[10], (1, OUT)),
    }


if __name__ == "__main__":
    key = jax.random.PRNGKey(0)
    k_tok, k_par = jax.random.split(key)

    token_ids = jax.random.randint(k_tok, (B, T), 0, VOCAB, dtype=jnp.int32)
    params = init_params(k_par)

    # One-time packing/folding — NOT in the per-call hot path.
    prepared = prepare_params(params)

    out = jax.block_until_ready(net_forward(token_ids, prepared))     # (B, 1)
    ref = jax.block_until_ready(reference_forward(token_ids, params))

    assert out.shape == (B, 1), out.shape
    assert jnp.allclose(out, ref, atol=1e-4, rtol=1e-4), (out, ref)

    print("KERNEL_OK")
</pallas_src>

<mosaic_0001>
module attributes {stable_mosaic.version = 11 : i64} {
  func.func @bilstm_head_kernel(%arg0: memref<2x8xi32, #tpu.memory_space<smem>>, %arg1: memref<100x64xf32, #tpu.memory_space<vmem>>, %arg2: memref<64x256xf32, #tpu.memory_space<vmem>>, %arg3: memref<32x128xf32, #tpu.memory_space<vmem>>, %arg4: memref<8x256xf32, #tpu.memory_space<vmem>>, %arg5: memref<2x1xf32, #tpu.memory_space<vmem>>, %arg6: memref<64x64xf32, #tpu.memory_space<vmem>>) attributes {dimension_semantics = [], scalar_prefetch = 0 : i64, scratch_operands = 1 : i64, tpu.core_type = #tpu.core_type<tc>} {
    %cst = arith.constant 0.000000e+00 : f32
    %0 = vector.broadcast %cst : f32 to vector<64x64xf32>
    %c0 = arith.constant 0 : index
    %c0_0 = arith.constant 0 : index
    %1 = vector.load %arg6[%c0, %c0_0] : memref<64x64xf32, #tpu.memory_space<vmem>>, vector<64x64xf32>
    tpu.vector_store %arg6[%c0, %c0_0], %0 {strides = array<i32>} : memref<64x64xf32, #tpu.memory_space<vmem>>, vector<64x64xf32>,
    %c0_1 = arith.constant 0 : index
    %c0_2 = arith.constant 0 : index
    %2 = memref.load %arg0[%c0_1, %c0_2] : memref<2x8xi32, #tpu.memory_space<smem>>
    %3 = arith.index_cast %2 : i32 to index
    %c0_3 = arith.constant 0 : index
    %4 = vector.load %arg1[%3, %c0_3] : memref<100x64xf32, #tpu.memory_space<vmem>>, vector<1x64xf32>
    %c0_4 = arith.constant 0 : index
    %c0_5 = arith.constant 0 : index
    %5 = vector.load %arg6[%c0_4, %c0_5] : memref<64x64xf32, #tpu.memory_space<vmem>>, vector<1x64xf32>
    tpu.vector_store %arg6[%c0_4, %c0_5], %4 {strides = array<i32>} : memref<64x64xf32, #tpu.memory_space<vmem>>, vector<1x64xf32>,
    %c1 = arith.constant 1 : index
    %c0_6 = arith.constant 0 : index
    %6 = memref.load %arg0[%c1, %c0_6] : memref<2x8xi32, #tpu.memory_space<smem>>
    %7 = arith.index_cast %6 : i32 to index
    %c0_7 = arith.constant 0 : index
    %8 = vector.load %arg1[%7, %c0_7] : memref<100x64xf32, #tpu.memory_space<vmem>>, vector<1x64xf32>
    %c1_8 = arith.constant 1 : index
    %c0_9 = arith.constant 0 : index
    %9 = vector.load %arg6[%c1_8, %c0_9] : memref<64x64xf32, #tpu.memory_space<vmem>>, vector<1x64xf32>
    tpu.vector_store %arg6[%c1_8, %c0_9], %8 {strides = array<i32>} : memref<64x64xf32, #tpu.memory_space<vmem>>, vector<1x64xf32>,
    %c0_10 = arith.constant 0 : index
    %c1_11 = arith.constant 1 : index
    %10 = memref.load %arg0[%c0_10, %c1_11] : memref<2x8xi32, #tpu.memory_space<smem>>
    %11 = arith.index_cast %10 : i32 to index
    %c0_12 = arith.constant 0 : index
    %12 = vector.load %arg1[%11, %c0_12] : memref<100x64xf32, #tpu.memory_space<vmem>>, vector<1x64xf32>
    %c8 = arith.constant 8 : index
    %c0_13 = arith.constant 0 : index
    %13 = vector.load %arg6[%c8, %c0_13] : memref<64x64xf32, #tpu.memory_space<vmem>>, vector<1x64xf32>
    tpu.vector_store %arg6[%c8, %c0_13], %12 {strides = array<i32>} : memref<64x64xf32, #tpu.memory_space<vmem>>, vector<1x64xf32>,
    %c1_14 = arith.constant 1 : index
    %c1_15 = arith.constant 1 : index
    %14 = memref.load %arg0[%c1_14, %c1_15] : memref<2x8xi32, #tpu.memory_space<smem>>
    %15 = arith.index_cast %14 : i32 to index
    %c0_16 = arith.constant 0 : index
    %16 = vector.load %arg1[%15, %c0_16] : memref<100x64xf32, #tpu.memory_space<vmem>>, vector<1x64xf32>
    %c9 = arith.constant 9 : index
    %c0_17 = arith.constant 0 : index
    %17 = vector.load %arg6[%c9, %c0_17] : memref<64x64xf32, #tpu.memory_space<vmem>>, vector<1x64xf32>
    tpu.vector_store %arg6[%c9, %c0_17], %16 {strides = array<i32>} : memref<64x64xf32, #tpu.memory_space<vmem>>, vector<1x64xf32>,
    %c0_18 = arith.constant 0 : index
    %c2 = arith.constant 2 : index
    %18 = memref.load %arg0[%c0_18, %c2] : memref<2x8xi32, #tpu.memory_space<smem>>
    %19 = arith.index_cast %18 : i32 to index
    %c0_19 = arith.constant 0 : index
    %20 = vector.load %arg1[%19, %c0_19] : memref<100x64xf32, #tpu.memory_space<vmem>>, vector<1x64xf32>
    %c16 = arith.constant 16 : index
    %c0_20 = arith.constant 0 : index
    %21 = vector.load %arg6[%c16, %c0_20] : memref<64x64xf32, #tpu.memory_space<vmem>>, vector<1x64xf32>
    tpu.vector_store %arg6[%c16, %c0_20], %20 {strides = array<i32>} : memref<64x64xf32, #tpu.memory_space<vmem>>, vector<1x64xf32>,
    %c1_21 = arith.constant 1 : index
    %c2_22 = arith.constant 2 : index
    %22 = memref.load %arg0[%c1_21, %c2_22] : memref<2x8xi32, #tpu.memory_space<smem>>
    %23 = arith.index_cast %22 : i32 to index
    %c0_23 = arith.constant 0 : index
    %24 = vector.load %arg1[%23, %c0_23] : memref<100x64xf32, #tpu.memory_space<vmem>>, vector<1x64xf32>
    %c17 = arith.constant 17 : index
    %c0_24 = arith.constant 0 : index
    %25 = vector.load %arg6[%c17, %c0_24] : memref<64x64xf32, #tpu.memory_space<vmem>>, vector<1x64xf32>
    tpu.vector_store %arg6[%c17, %c0_24], %24 {strides = array<i32>} : memref<64x64xf32, #tpu.memory_space<vmem>>, vector<1x64xf32>,
    %c0_25 = arith.constant 0 : index
    %c3 = arith.constant 3 : index
    %26 = memref.load %arg0[%c0_25, %c3] : memref<2x8xi32, #tpu.memory_space<smem>>
    %27 = arith.index_cast %26 : i32 to index
    %c0_26 = arith.constant 0 : index
    %28 = vector.load %arg1[%27, %c0_26] : memref<100x64xf32, #tpu.memory_space<vmem>>, vector<1x64xf32>
    %c24 = arith.constant 24 : index
    %c0_27 = arith.constant 0 : index
    %29 = vector.load %arg6[%c24, %c0_27] : memref<64x64xf32, #tpu.memory_space<vmem>>, vector<1x64xf32>
    tpu.vector_store %arg6[%c24, %c0_27], %28 {strides = array<i32>} : memref<64x64xf32, #tpu.memory_space<vmem>>, vector<1x64xf32>,
    %c1_28 = arith.constant 1 : index
    %c3_29 = arith.constant 3 : index
    %30 = memref.load %arg0[%c1_28, %c3_29] : memref<2x8xi32, #tpu.memory_space<smem>>
    %31 = arith.index_cast %30 : i32 to index
    %c0_30 = arith.constant 0 : index
    %32 = vector.load %arg1[%31, %c0_30] : memref<100x64xf32, #tpu.memory_space<vmem>>, vector<1x64xf32>
    %c25 = arith.constant 25 : index
    %c0_31 = arith.constant 0 : index
    %33 = vector.load %arg6[%c25, %c0_31] : memref<64x64xf32, #tpu.memory_space<vmem>>, vector<1x64xf32>
    tpu.vector_store %arg6[%c25, %c0_31], %32 {strides = array<i32>} : memref<64x64xf32, #tpu.memory_space<vmem>>, vector<1x64xf32>,
    %c0_32 = arith.constant 0 : index
    %c4 = arith.constant 4 : index
    %34 = memref.load %arg0[%c0_32, %c4] : memref<2x8xi32, #tpu.memory_space<smem>>
    %35 = arith.index_cast %34 : i32 to index
    %c0_33 = arith.constant 0 : index
    %36 = vector.load %arg1[%35, %c0_33] : memref<100x64xf32, #tpu.memory_space<vmem>>, vector<1x64xf32>
    %c32 = arith.constant 32 : index
    %c0_34 = arith.constant 0 : index
    %37 = vector.load %arg6[%c32, %c0_34] : memref<64x64xf32, #tpu.memory_space<vmem>>, vector<1x64xf32>
    tpu.vector_store %arg6[%c32, %c0_34], %36 {strides = array<i32>} : memref<64x64xf32, #tpu.memory_space<vmem>>, vector<1x64xf32>,
    %c1_35 = arith.constant 1 : index
    %c4_36 = arith.constant 4 : index
    %38 = memref.load %arg0[%c1_35, %c4_36] : memref<2x8xi32, #tpu.memory_space<smem>>
    %39 = arith.index_cast %38 : i32 to index
    %c0_37 = arith.constant 0 : index
    %40 = vector.load %arg1[%39, %c0_37] : memref<100x64xf32, #tpu.memory_space<vmem>>, vector<1x64xf32>
    %c33 = arith.constant 33 : index
    %c0_38 = arith.constant 0 : index
    %41 = vector.load %arg6[%c33, %c0_38] : memref<64x64xf32, #tpu.memory_space<vmem>>, vector<1x64xf32>
    tpu.vector_store %arg6[%c33, %c0_38], %40 {strides = array<i32>} : memref<64x64xf32, #tpu.memory_space<vmem>>, vector<1x64xf32>,
    %c0_39 = arith.constant 0 : index
    %c5 = arith.constant 5 : index
    %42 = memref.load %arg0[%c0_39, %c5] : memref<2x8xi32, #tpu.memory_space<smem>>
    %43 = arith.index_cast %42 : i32 to index
    %c0_40 = arith.constant 0 : index
    %44 = vector.load %arg1[%43, %c0_40] : memref<100x64xf32, #tpu.memory_space<vmem>>, vector<1x64xf32>
    %c40 = arith.constant 40 : index
    %c0_41 = arith.constant 0 : index
    %45 = vector.load %arg6[%c40, %c0_41] : memref<64x64xf32, #tpu.memory_space<vmem>>, vector<1x64xf32>
    tpu.vector_store %arg6[%c40, %c0_41], %44 {strides = array<i32>} : memref<64x64xf32, #tpu.memory_space<vmem>>, vector<1x64xf32>,
    %c1_42 = arith.constant 1 : index
    %c5_43 = arith.constant 5 : index
    %46 = memref.load %arg0[%c1_42, %c5_43] : memref<2x8xi32, #tpu.memory_space<smem>>
    %47 = arith.index_cast %46 : i32 to index
    %c0_44 = arith.constant 0 : index
    %48 = vector.load %arg1[%47, %c0_44] : memref<100x64xf32, #tpu.memory_space<vmem>>, vector<1x64xf32>
    %c41 = arith.constant 41 : index
    %c0_45 = arith.constant 0 : index
    %49 = vector.load %arg6[%c41, %c0_45] : memref<64x64xf32, #tpu.memory_space<vmem>>, vector<1x64xf32>
    tpu.vector_store %arg6[%c41, %c0_45], %48 {strides = array<i32>} : memref<64x64xf32, #tpu.memory_space<vmem>>, vector<1x64xf32>,
    %c0_46 = arith.constant 0 : index
    %c6 = arith.constant 6 : index
    %50 = memref.load %arg0[%c0_46, %c6] : memref<2x8xi32, #tpu.memory_space<smem>>
    %51 = arith.index_cast %50 : i32 to index
    %c0_47 = arith.constant 0 : index
    %52 = vector.load %arg1[%51, %c0_47] : memref<100x64xf32, #tpu.memory_space<vmem>>, vector<1x64xf32>
    %c48 = arith.constant 48 : index
    %c0_48 = arith.constant 0 : index
    %53 = vector.load %arg6[%c48, %c0_48] : memref<64x64xf32, #tpu.memory_space<vmem>>, vector<1x64xf32>
    tpu.vector_store %arg6[%c48, %c0_48], %52 {strides = array<i32>} : memref<64x64xf32, #tpu.memory_space<vmem>>, vector<1x64xf32>,
    %c1_49 = arith.constant 1 : index
    %c6_50 = arith.constant 6 : index
    %54 = memref.load %arg0[%c1_49, %c6_50] : memref<2x8xi32, #tpu.memory_space<smem>>
    %55 = arith.index_cast %54 : i32 to index
    %c0_51 = arith.constant 0 : index
    %56 = vector.load %arg1[%55, %c0_51] : memref<100x64xf32, #tpu.memory_space<vmem>>, vector<1x64xf32>
    %c49 = arith.constant 49 : index
    %c0_52 = arith.constant 0 : index
    %57 = vector.load %arg6[%c49, %c0_52] : memref<64x64xf32, #tpu.memory_space<vmem>>, vector<1x64xf32>
    tpu.vector_store %arg6[%c49, %c0_52], %56 {strides = array<i32>} : memref<64x64xf32, #tpu.memory_space<vmem>>, vector<1x64xf32>,
    %c0_53 = arith.constant 0 : index
    %c7 = arith.constant 7 : index
    %58 = memref.load %arg0[%c0_53, %c7] : memref<2x8xi32, #tpu.memory_space<smem>>
    %59 = arith.index_cast %58 : i32 to index
    %c0_54 = arith.constant 0 : index
    %60 = vector.load %arg1[%59, %c0_54] : memref<100x64xf32, #tpu.memory_space<vmem>>, vector<1x64xf32>
    %c56 = arith.constant 56 : index
    %c0_55 = arith.constant 0 : index
    %61 = vector.load %arg6[%c56, %c0_55] : memref<64x64xf32, #tpu.memory_space<vmem>>, vector<1x64xf32>
    tpu.vector_store %arg6[%c56, %c0_55], %60 {strides = array<i32>} : memref<64x64xf32, #tpu.memory_space<vmem>>, vector<1x64xf32>,
    %c1_56 = arith.constant 1 : index
    %c7_57 = arith.constant 7 : index
    %62 = memref.load %arg0[%c1_56, %c7_57] : memref<2x8xi32, #tpu.memory_space<smem>>
    %63 = arith.index_cast %62 : i32 to index
    %c0_58 = arith.constant 0 : index
    %64 = vector.load %arg1[%63, %c0_58] : memref<100x64xf32, #tpu.memory_space<vmem>>, vector<1x64xf32>
    %c57 = arith.constant 57 : index
    %c0_59 = arith.constant 0 : index
    %65 = vector.load %arg6[%c57, %c0_59] : memref<64x64xf32, #tpu.memory_space<vmem>>, vector<1x64xf32>
    tpu.vector_store %arg6[%c57, %c0_59], %64 {strides = array<i32>} : memref<64x64xf32, #tpu.memory_space<vmem>>, vector<1x64xf32>,
    %c0_60 = arith.constant 0 : index
    %c0_61 = arith.constant 0 : index
    %66 = vector.load %arg4[%c0_60, %c0_61] : memref<8x256xf32, #tpu.memory_space<vmem>>, vector<8x256xf32>
    %67 = vector.extract_strided_slice %66 {offsets = [0, 0], sizes = [1, 256], strides = [1, 1]} : vector<8x256xf32> to vector<1x256xf32>
    %c0_62 = arith.constant 0 : index
    %c0_63 = arith.constant 0 : index
    %68 = vector.load %arg6[%c0_62, %c0_63] : memref<64x64xf32, #tpu.memory_space<vmem>>, vector<64x64xf32>
    %c0_64 = arith.constant 0 : index
    %c0_65 = arith.constant 0 : index
    %69 = vector.load %arg2[%c0_64, %c0_65] : memref<64x256xf32, #tpu.memory_space<vmem>>, vector<64x256xf32>
    %cst_66 = arith.constant dense<0.000000e+00> : vector<64x256xf32>
    %70 = tpu.matmul %68, %69, %cst_66 {dimension_numbers = #tpu.dot_dimension_numbers<[1], [0], [0], [1], [0, 0, 1, 1], [], []>} : vector<64x64xf32>, vector<64x256xf32>, vector<64x256xf32> -> vector<64x256xf32>
    %71 = vector.broadcast %67 : vector<1x256xf32> to vector<64x256xf32>
    %72 = arith.addf %70, %71 : vector<64x256xf32>
    %73 = tpu.iota {dimensions = array<i32: 1>} : vector<8x128xi32>
    %c64_i32 = arith.constant 64 : i32
    %74 = vector.broadcast %c64_i32 : i32 to vector<8x128xi32>
    %75 = arith.cmpi sge, %73, %74 : vector<8x128xi32>
    %c96_i32 = arith.constant 96 : i32
    %76 = vector.broadcast %c96_i32 : i32 to vector<8x128xi32>
    %77 = arith.cmpi slt, %73, %76 : vector<8x128xi32>
    %78 = arith.andi %75, %77 : vector<8x128xi1>
    %c0_67 = arith.constant 0 : index
    %c0_68 = arith.constant 0 : index
    %79 = vector.load %arg3[%c0_67, %c0_68] : memref<32x128xf32, #tpu.memory_space<vmem>>, vector<32x128xf32>
    %cst_69 = arith.constant 0.000000e+00 : f32
    %80 = vector.broadcast %cst_69 : f32 to vector<8x32xf32>
    %cst_70 = arith.constant 0.000000e+00 : f32
    %81 = vector.broadcast %cst_70 : f32 to vector<8x32xf32>
    %82 = vector.extract_strided_slice %72 {offsets = [0, 0], sizes = [8, 128], strides = [1, 1]} : vector<64x256xf32> to vector<8x128xf32>
    %cst_71 = arith.constant dense<0.000000e+00> : vector<8x128xf32>
    %83 = tpu.matmul %80, %79, %cst_71 {dimension_numbers = #tpu.dot_dimension_numbers<[1], [0], [0], [1], [0, 0, 1, 1], [], []>} : vector<8x32xf32>, vector<32x128xf32>, vector<8x128xf32> -> vector<8x128xf32>
    %84 = arith.addf %82, %83 : vector<8x128xf32>
    %cst_72 = arith.constant 5.000000e-01 : f32
    %85 = vector.broadcast %cst_72 : f32 to vector<8x128xf32>
    %86 = arith.mulf %85, %84 : vector<8x128xf32>
    %87 = arith.select %78, %84, %86 : vector<8x128xi1>, vector<8x128xf32>
    %88 = math.tanh %87 : vector<8x128xf32>
    %cst_73 = arith.constant 1.000000e+00 : f32
    %89 = vector.broadcast %cst_73 : f32 to vector<8x128xf32>
    %90 = arith.addf %88, %89 : vector<8x128xf32>
    %cst_74 = arith.constant 5.000000e-01 : f32
    %91 = vector.broadcast %cst_74 : f32 to vector<8x128xf32>
    %92 = arith.mulf %91, %90 : vector<8x128xf32>
    %93 = arith.select %78, %88, %92 : vector<8x128xi1>, vector<8x128xf32>
    %94 = vector.extract_strided_slice %93 {offsets = [0, 0], sizes = [8, 32], strides = [1, 1]} : vector<8x128xf32> to vector<8x32xf32>
    %95 = vector.extract_strided_slice %93 {offsets = [0, 32], sizes = [8, 32], strides = [1, 1]} : vector<8x128xf32> to vector<8x32xf32>
    %96 = vector.extract_strided_slice %93 {offsets = [0, 64], sizes = [8, 32], strides = [1, 1]} : vector<8x128xf32> to vector<8x32xf32>
    %97 = vector.extract_strided_slice %93 {offsets = [0, 96], sizes = [8, 32], strides = [1, 1]} : vector<8x128xf32> to vector<8x32xf32>
    %98 = arith.mulf %95, %81 : vector<8x32xf32>
    %99 = arith.mulf %94, %96 : vector<8x32xf32>
    %100 = arith.addf %98, %99 : vector<8x32xf32>
    %101 = math.tanh %100 : vector<8x32xf32>
    %102 = arith.mulf %97, %101 : vector<8x32xf32>
    %103 = vector.extract_strided_slice %72 {offsets = [8, 0], sizes = [8, 128], strides = [1, 1]} : vector<64x256xf32> to vector<8x128xf32>
    %cst_75 = arith.constant dense<0.000000e+00> : vector<8x128xf32>
    %104 = tpu.matmul %102, %79, %cst_75 {dimension_numbers = #tpu.dot_dimension_numbers<[1], [0], [0], [1], [0, 0, 1, 1], [], []>} : vector<8x32xf32>, vector<32x128xf32>, vector<8x128xf32> -> vector<8x128xf32>
    %105 = arith.addf %103, %104 : vector<8x128xf32>
    %cst_76 = arith.constant 5.000000e-01 : f32
    %106 = vector.broadcast %cst_76 : f32 to vector<8x128xf32>
    %107 = arith.mulf %106, %105 : vector<8x128xf32>
    %108 = arith.select %78, %105, %107 : vector<8x128xi1>, vector<8x128xf32>
    %109 = math.tanh %108 : vector<8x128xf32>
    %cst_77 = arith.constant 1.000000e+00 : f32
    %110 = vector.broadcast %cst_77 : f32 to vector<8x128xf32>
    %111 = arith.addf %109, %110 : vector<8x128xf32>
    %cst_78 = arith.constant 5.000000e-01 : f32
    %112 = vector.broadcast %cst_78 : f32 to vector<8x128xf32>
    %113 = arith.mulf %112, %111 : vector<8x128xf32>
    %114 = arith.select %78, %109, %113 : vector<8x128xi1>, vector<8x128xf32>
    %115 = vector.extract_strided_slice %114 {offsets = [0, 0], sizes = [8, 32], strides = [1, 1]} : vector<8x128xf32> to vector<8x32xf32>
    %116 = vector.extract_strided_slice %114 {offsets = [0, 32], sizes = [8, 32], strides = [1, 1]} : vector<8x128xf32> to vector<8x32xf32>
    %117 = vector.extract_strided_slice %114 {offsets = [0, 64], sizes = [8, 32], strides = [1, 1]} : vector<8x128xf32> to vector<8x32xf32>
    %118 = vector.extract_strided_slice %114 {offsets = [0, 96], sizes = [8, 32], strides = [1, 1]} : vector<8x128xf32> to vector<8x32xf32>
    %119 = arith.mulf %116, %100 : vector<8x32xf32>
    %120 = arith.mulf %115, %117 : vector<8x32xf32>
    %121 = arith.addf %119, %120 : vector<8x32xf32>
    %122 = math.tanh %121 : vector<8x32xf32>
    %123 = arith.mulf %118, %122 : vector<8x32xf32>
    %124 = vector.extract_strided_slice %72 {offsets = [16, 0], sizes = [8, 128], strides = [1, 1]} : vector<64x256xf32> to vector<8x128xf32>
    %cst_79 = arith.constant dense<0.000000e+00> : vector<8x128xf32>
    %125 = tpu.matmul %123, %79, %cst_79 {dimension_numbers = #tpu.dot_dimension_numbers<[1], [0], [0], [1], [0, 0, 1, 1], [], []>} : vector<8x32xf32>, vector<32x128xf32>, vector<8x128xf32> -> vector<8x128xf32>
    %126 = arith.addf %124, %125 : vector<8x128xf32>
    %cst_80 = arith.constant 5.000000e-01 : f32
    %127 = vector.broadcast %cst_80 : f32 to vector<8x128xf32>
    %128 = arith.mulf %127, %126 : vector<8x128xf32>
    %129 = arith.select %78, %126, %128 : vector<8x128xi1>, vector<8x128xf32>
    %130 = math.tanh %129 : vector<8x128xf32>
    %cst_81 = arith.constant 1.000000e+00 : f32
    %131 = vector.broadcast %cst_81 : f32 to vector<8x128xf32>
    %132 = arith.addf %130, %131 : vector<8x128xf32>
    %cst_82 = arith.constant 5.000000e-01 : f32
    %133 = vector.broadcast %cst_82 : f32 to vector<8x128xf32>
    %134 = arith.mulf %133, %132 : vector<8x128xf32>
    %135 = arith.select %78, %130, %134 : vector<8x128xi1>, vector<8x128xf32>
    %136 = vector.extract_strided_slice %135 {offsets = [0, 0], sizes = [8, 32], strides = [1, 1]} : vector<8x128xf32> to vector<8x32xf32>
    %137 = vector.extract_strided_slice %135 {offsets = [0, 32], sizes = [8, 32], strides = [1, 1]} : vector<8x128xf32> to vector<8x32xf32>
    %138 = vector.extract_strided_slice %135 {offsets = [0, 64], sizes = [8, 32], strides = [1, 1]} : vector<8x128xf32> to vector<8x32xf32>
    %139 = vector.extract_strided_slice %135 {offsets = [0, 96], sizes = [8, 32], strides = [1, 1]} : vector<8x128xf32> to vector<8x32xf32>
    %140 = arith.mulf %137, %121 : vector<8x32xf32>
    %141 = arith.mulf %136, %138 : vector<8x32xf32>
    %142 = arith.addf %140, %141 : vector<8x32xf32>
    %143 = math.tanh %142 : vector<8x32xf32>
    %144 = arith.mulf %139, %143 : vector<8x32xf32>
    %145 = vector.extract_strided_slice %72 {offsets = [24, 0], sizes = [8, 128], strides = [1, 1]} : vector<64x256xf32> to vector<8x128xf32>
    %cst_83 = arith.constant dense<0.000000e+00> : vector<8x128xf32>
    %146 = tpu.matmul %144, %79, %cst_83 {dimension_numbers = #tpu.dot_dimension_numbers<[1], [0], [0], [1], [0, 0, 1, 1], [], []>} : vector<8x32xf32>, vector<32x128xf32>, vector<8x128xf32> -> vector<8x128xf32>
    %147 = arith.addf %145, %146 : vector<8x128xf32>
    %cst_84 = arith.constant 5.000000e-01 : f32
    %148 = vector.broadcast %cst_84 : f32 to vector<8x128xf32>
    %149 = arith.mulf %148, %147 : vector<8x128xf32>
    %150 = arith.select %78, %147, %149 : vector<8x128xi1>, vector<8x128xf32>
    %151 = math.tanh %150 : vector<8x128xf32>
    %cst_85 = arith.constant 1.000000e+00 : f32
    %152 = vector.broadcast %cst_85 : f32 to vector<8x128xf32>
    %153 = arith.addf %151, %152 : vector<8x128xf32>
    %cst_86 = arith.constant 5.000000e-01 : f32
    %154 = vector.broadcast %cst_86 : f32 to vector<8x128xf32>
    %155 = arith.mulf %154, %153 : vector<8x128xf32>
    %156 = arith.select %78, %151, %155 : vector<8x128xi1>, vector<8x128xf32>
    %157 = vector.extract_strided_slice %156 {offsets = [0, 0], sizes = [8, 32], strides = [1, 1]} : vector<8x128xf32> to vector<8x32xf32>
    %158 = vector.extract_strided_slice %156 {offsets = [0, 32], sizes = [8, 32], strides = [1, 1]} : vector<8x128xf32> to vector<8x32xf32>
    %159 = vector.extract_strided_slice %156 {offsets = [0, 64], sizes = [8, 32], strides = [1, 1]} : vector<8x128xf32> to vector<8x32xf32>
    %160 = vector.extract_strided_slice %156 {offsets = [0, 96], sizes = [8, 32], strides = [1, 1]} : vector<8x128xf32> to vector<8x32xf32>
    %161 = arith.mulf %158, %142 : vector<8x32xf32>
    %162 = arith.mulf %157, %159 : vector<8x32xf32>
    %163 = arith.addf %161, %162 : vector<8x32xf32>
    %164 = math.tanh %163 : vector<8x32xf32>
    %165 = arith.mulf %160, %164 : vector<8x32xf32>
    %166 = vector.extract_strided_slice %72 {offsets = [32, 0], sizes = [8, 128], strides = [1, 1]} : vector<64x256xf32> to vector<8x128xf32>
    %cst_87 = arith.constant dense<0.000000e+00> : vector<8x128xf32>
    %167 = tpu.matmul %165, %79, %cst_87 {dimension_numbers = #tpu.dot_dimension_numbers<[1], [0], [0], [1], [0, 0, 1, 1], [], []>} : vector<8x32xf32>, vector<32x128xf32>, vector<8x128xf32> -> vector<8x128xf32>
    %168 = arith.addf %166, %167 : vector<8x128xf32>
    %cst_88 = arith.constant 5.000000e-01 : f32
    %169 = vector.broadcast %cst_88 : f32 to vector<8x128xf32>
    %170 = arith.mulf %169, %168 : vector<8x128xf32>
    %171 = arith.select %78, %168, %170 : vector<8x128xi1>, vector<8x128xf32>
    %172 = math.tanh %171 : vector<8x128xf32>
    %cst_89 = arith.constant 1.000000e+00 : f32
    %173 = vector.broadcast %cst_89 : f32 to vector<8x128xf32>
    %174 = arith.addf %172, %173 : vector<8x128xf32>
    %cst_90 = arith.constant 5.000000e-01 : f32
    %175 = vector.broadcast %cst_90 : f32 to vector<8x128xf32>
    %176 = arith.mulf %175, %174 : vector<8x128xf32>
    %177 = arith.select %78, %172, %176 : vector<8x128xi1>, vector<8x128xf32>
    %178 = vector.extract_strided_slice %177 {offsets = [0, 0], sizes = [8, 32], strides = [1, 1]} : vector<8x128xf32> to vector<8x32xf32>
    %179 = vector.extract_strided_slice %177 {offsets = [0, 32], sizes = [8, 32], strides = [1, 1]} : vector<8x128xf32> to vector<8x32xf32>
    %180 = vector.extract_strided_slice %177 {offsets = [0, 64], sizes = [8, 32], strides = [1, 1]} : vector<8x128xf32> to vector<8x32xf32>
    %181 = vector.extract_strided_slice %177 {offsets = [0, 96], sizes = [8, 32], strides = [1, 1]} : vector<8x128xf32> to vector<8x32xf32>
    %182 = arith.mulf %179, %163 : vector<8x32xf32>
    %183 = arith.mulf %178, %180 : vector<8x32xf32>
    %184 = arith.addf %182, %183 : vector<8x32xf32>
    %185 = math.tanh %184 : vector<8x32xf32>
    %186 = arith.mulf %181, %185 : vector<8x32xf32>
    %187 = vector.extract_strided_slice %72 {offsets = [40, 0], sizes = [8, 128], strides = [1, 1]} : vector<64x256xf32> to vector<8x128xf32>
    %cst_91 = arith.constant dense<0.000000e+00> : vector<8x128xf32>
    %188 = tpu.matmul %186, %79, %cst_91 {dimension_numbers = #tpu.dot_dimension_numbers<[1], [0], [0], [1], [0, 0, 1, 1], [], []>} : vector<8x32xf32>, vector<32x128xf32>, vector<8x128xf32> -> vector<8x128xf32>
    %189 = arith.addf %187, %188 : vector<8x128xf32>
    %cst_92 = arith.constant 5.000000e-01 : f32
    %190 = vector.broadcast %cst_92 : f32 to vector<8x128xf32>
    %191 = arith.mulf %190, %189 : vector<8x128xf32>
    %192 = arith.select %78, %189, %191 : vector<8x128xi1>, vector<8x128xf32>
    %193 = math.tanh %192 : vector<8x128xf32>
    %cst_93 = arith.constant 1.000000e+00 : f32
    %194 = vector.broadcast %cst_93 : f32 to vector<8x128xf32>
    %195 = arith.addf %193, %194 : vector<8x128xf32>
    %cst_94 = arith.constant 5.000000e-01 : f32
    %196 = vector.broadcast %cst_94 : f32 to vector<8x128xf32>
    %197 = arith.mulf %196, %195 : vector<8x128xf32>
    %198 = arith.select %78, %193, %197 : vector<8x128xi1>, vector<8x128xf32>
    %199 = vector.extract_strided_slice %198 {offsets = [0, 0], sizes = [8, 32], strides = [1, 1]} : vector<8x128xf32> to vector<8x32xf32>
    %200 = vector.extract_strided_slice %198 {offsets = [0, 32], sizes = [8, 32], strides = [1, 1]} : vector<8x128xf32> to vector<8x32xf32>
    %201 = vector.extract_strided_slice %198 {offsets = [0, 64], sizes = [8, 32], strides = [1, 1]} : vector<8x128xf32> to vector<8x32xf32>
    %202 = vector.extract_strided_slice %198 {offsets = [0, 96], sizes = [8, 32], strides = [1, 1]} : vector<8x128xf32> to vector<8x32xf32>
    %203 = arith.mulf %200, %184 : vector<8x32xf32>
    %204 = arith.mulf %199, %201 : vector<8x32xf32>
    %205 = arith.addf %203, %204 : vector<8x32xf32>
    %206 = math.tanh %205 : vector<8x32xf32>
    %207 = arith.mulf %202, %206 : vector<8x32xf32>
    %208 = vector.extract_strided_slice %72 {offsets = [48, 0], sizes = [8, 128], strides = [1, 1]} : vector<64x256xf32> to vector<8x128xf32>
    %cst_95 = arith.constant dense<0.000000e+00> : vector<8x128xf32>
    %209 = tpu.matmul %207, %79, %cst_95 {dimension_numbers = #tpu.dot_dimension_numbers<[1], [0], [0], [1], [0, 0, 1, 1], [], []>} : vector<8x32xf32>, vector<32x128xf32>, vector<8x128xf32> -> vector<8x128xf32>
    %210 = arith.addf %208, %209 : vector<8x128xf32>
    %cst_96 = arith.constant 5.000000e-01 : f32
    %211 = vector.broadcast %cst_96 : f32 to vector<8x128xf32>
    %212 = arith.mulf %211, %210 : vector<8x128xf32>
    %213 = arith.select %78, %210, %212 : vector<8x128xi1>, vector<8x128xf32>
    %214 = math.tanh %213 : vector<8x128xf32>
    %cst_97 = arith.constant 1.000000e+00 : f32
    %215 = vector.broadcast %cst_97 : f32 to vector<8x128xf32>
    %216 = arith.addf %214, %215 : vector<8x128xf32>
    %cst_98 = arith.constant 5.000000e-01 : f32
    %217 = vector.broadcast %cst_98 : f32 to vector<8x128xf32>
    %218 = arith.mulf %217, %216 : vector<8x128xf32>
    %219 = arith.select %78, %214, %218 : vector<8x128xi1>, vector<8x128xf32>
    %220 = vector.extract_strided_slice %219 {offsets = [0, 0], sizes = [8, 32], strides = [1, 1]} : vector<8x128xf32> to vector<8x32xf32>
    %221 = vector.extract_strided_slice %219 {offsets = [0, 32], sizes = [8, 32], strides = [1, 1]} : vector<8x128xf32> to vector<8x32xf32>
    %222 = vector.extract_strided_slice %219 {offsets = [0, 64], sizes = [8, 32], strides = [1, 1]} : vector<8x128xf32> to vector<8x32xf32>
    %223 = vector.extract_strided_slice %219 {offsets = [0, 96], sizes = [8, 32], strides = [1, 1]} : vector<8x128xf32> to vector<8x32xf32>
    %224 = arith.mulf %221, %205 : vector<8x32xf32>
    %225 = arith.mulf %220, %222 : vector<8x32xf32>
    %226 = arith.addf %224, %225 : vector<8x32xf32>
    %227 = math.tanh %226 : vector<8x32xf32>
    %228 = arith.mulf %223, %227 : vector<8x32xf32>
    %229 = vector.extract_strided_slice %72 {offsets = [56, 0], sizes = [8, 128], strides = [1, 1]} : vector<64x256xf32> to vector<8x128xf32>
    %cst_99 = arith.constant dense<0.000000e+00> : vector<8x128xf32>
    %230 = tpu.matmul %228, %79, %cst_99 {dimension_numbers = #tpu.dot_dimension_numbers<[1], [0], [0], [1], [0, 0, 1, 1], [], []>} : vector<8x32xf32>, vector<32x128xf32>, vector<8x128xf32> -> vector<8x128xf32>
    %231 = arith.addf %229, %230 : vector<8x128xf32>
    %cst_100 = arith.constant 5.000000e-01 : f32
    %232 = vector.broadcast %cst_100 : f32 to vector<8x128xf32>
    %233 = arith.mulf %232, %231 : vector<8x128xf32>
    %234 = arith.select %78, %231, %233 : vector<8x128xi1>, vector<8x128xf32>
    %235 = math.tanh %234 : vector<8x128xf32>
    %cst_101 = arith.constant 1.000000e+00 : f32
    %236 = vector.broadcast %cst_101 : f32 to vector<8x128xf32>
    %237 = arith.addf %235, %236 : vector<8x128xf32>
    %cst_102 = arith.constant 5.000000e-01 : f32
    %238 = vector.broadcast %cst_102 : f32 to vector<8x128xf32>
    %239 = arith.mulf %238, %237 : vector<8x128xf32>
    %240 = arith.select %78, %235, %239 : vector<8x128xi1>, vector<8x128xf32>
    %241 = vector.extract_strided_slice %240 {offsets = [0, 0], sizes = [8, 32], strides = [1, 1]} : vector<8x128xf32> to vector<8x32xf32>
    %242 = vector.extract_strided_slice %240 {offsets = [0, 32], sizes = [8, 32], strides = [1, 1]} : vector<8x128xf32> to vector<8x32xf32>
    %243 = vector.extract_strided_slice %240 {offsets = [0, 64], sizes = [8, 32], strides = [1, 1]} : vector<8x128xf32> to vector<8x32xf32>
    %244 = vector.extract_strided_slice %240 {offsets = [0, 96], sizes = [8, 32], strides = [1, 1]} : vector<8x128xf32> to vector<8x32xf32>
    %245 = arith.mulf %242, %226 : vector<8x32xf32>
    %246 = arith.mulf %241, %243 : vector<8x32xf32>
    %247 = arith.addf %245, %246 : vector<8x32xf32>
    %248 = math.tanh %247 : vector<8x32xf32>
    %249 = arith.mulf %244, %248 : vector<8x32xf32>
    %250 = vector.extract_strided_slice %72 {offsets = [56, 128], sizes = [8, 128], strides = [1, 1]} : vector<64x256xf32> to vector<8x128xf32>
    %cst_103 = arith.constant 5.000000e-01 : f32
    %251 = vector.broadcast %cst_103 : f32 to vector<8x128xf32>
    %252 = arith.mulf %251, %250 : vector<8x128xf32>
    %253 = arith.select %78, %250, %252 : vector<8x128xi1>, vector<8x128xf32>
    %254 = math.tanh %253 : vector<8x128xf32>
    %cst_104 = arith.constant 1.000000e+00 : f32
    %255 = vector.broadcast %cst_104 : f32 to vector<8x128xf32>
    %256 = arith.addf %254, %255 : vector<8x128xf32>
    %cst_105 = arith.constant 5.000000e-01 : f32
    %257 = vector.broadcast %cst_105 : f32 to vector<8x128xf32>
    %258 = arith.mulf %257, %256 : vector<8x128xf32>
    %259 = arith.select %78, %254, %258 : vector<8x128xi1>, vector<8x128xf32>
    %cst_106 = arith.constant 0.000000e+00 : f32
    %260 = vector.broadcast %cst_106 : f32 to vector<8x32xf32>
    %261 = vector.extract_strided_slice %259 {offsets = [0, 0], sizes = [8, 32], strides = [1, 1]} : vector<8x128xf32> to vector<8x32xf32>
    %262 = vector.extract_strided_slice %259 {offsets = [0, 32], sizes = [8, 32], strides = [1, 1]} : vector<8x128xf32> to vector<8x32xf32>
    %263 = vector.extract_strided_slice %259 {offsets = [0, 64], sizes = [8, 32], strides = [1, 1]} : vector<8x128xf32> to vector<8x32xf32>
    %264 = vector.extract_strided_slice %259 {offsets = [0, 96], sizes = [8, 32], strides = [1, 1]} : vector<8x128xf32> to vector<8x32xf32>
    %265 = arith.mulf %262, %260 : vector<8x32xf32>
    %266 = arith.mulf %261, %263 : vector<8x32xf32>
    %267 = arith.addf %265, %266 : vector<8x32xf32>
    %268 = math.tanh %267 : vector<8x32xf32>
    %269 = arith.mulf %264, %268 : vector<8x32xf32>
    %270 = vector.extract_strided_slice %66 {offsets = [1, 0], sizes = [1, 64], strides = [1, 1]} : vector<8x256xf32> to vector<1x64xf32>
    %271 = vector.extract_strided_slice %66 {offsets = [2, 0], sizes = [1, 1], strides = [1, 1]} : vector<8x256xf32> to vector<1x1xf32>
    %272 = vector.extract_strided_slice %270 {offsets = [0, 0], sizes = [1, 32], strides = [1, 1]} : vector<1x64xf32> to vector<1x32xf32>
    %273 = vector.broadcast %272 : vector<1x32xf32> to vector<8x32xf32>
    %274 = arith.mulf %249, %273 : vector<8x32xf32>
    %cst_107 = arith.constant dense<0.000000e+00> : vector<8xf32>
    %275 = vector.multi_reduction <add>, %274, %cst_107 [1] : vector<8x32xf32> to vector<8xf32>
    %276 = vector.shape_cast %275 : vector<8xf32> to vector<8x1xf32>
    %277 = vector.extract_strided_slice %270 {offsets = [0, 32], sizes = [1, 32], strides = [1, 1]} : vector<1x64xf32> to vector<1x32xf32>
    %278 = vector.broadcast %277 : vector<1x32xf32> to vector<8x32xf32>
    %279 = arith.mulf %269, %278 : vector<8x32xf32>
    %cst_108 = arith.constant dense<0.000000e+00> : vector<8xf32>
    %280 = vector.multi_reduction <add>, %279, %cst_108 [1] : vector<8x32xf32> to vector<8xf32>
    %281 = vector.shape_cast %280 : vector<8xf32> to vector<8x1xf32>
    %282 = arith.addf %276, %281 : vector<8x1xf32>
    %283 = vector.broadcast %271 : vector<1x1xf32> to vector<8x1xf32>
    %284 = arith.addf %282, %283 : vector<8x1xf32>
    %285 = arith.negf %284 : vector<8x1xf32>
    %286 = math.exp %285 : vector<8x1xf32>
    %cst_109 = arith.constant 1.000000e+00 : f32
    %287 = vector.broadcast %cst_109 : f32 to vector<8x1xf32>
    %288 = arith.addf %287, %286 : vector<8x1xf32>
    %289 = arith.divf %287, %288 : vector<8x1xf32>
    %290 = vector.extract_strided_slice %289 {offsets = [0, 0], sizes = [2, 1], strides = [1, 1]} : vector<8x1xf32> to vector<2x1xf32>
    %c0_110 = arith.constant 0 : index
    %c0_111 = arith.constant 0 : index
    %291 = vector.load %arg5[%c0_110, %c0_111] : memref<2x1xf32, #tpu.memory_space<vmem>>, vector<2x1xf32>
    tpu.vector_store %arg5[%c0_110, %c0_111], %290 {strides = array<i32>} : memref<2x1xf32, #tpu.memory_space<vmem>>, vector<2x1xf32>,
    return
  }
}

</mosaic_0001>

<bundles_post_ra>
// kernel: net_forward.1
= control target key start
LH: loop header
LB: loop body
LE: loop exit
PB: predicated region body
PF: predicated region fallthrough
CT: control target
= control target key end

     0   :  { %10 = vsyncpa [#allocation4], 0  ;;  %s1828_s0 = inlined_call_operand.vmem [shape: s32[2,8], index: 0, kind: input, shape index: {}]   ;;  %s1829_s1 = inlined_call_operand.vmem [shape: f32[100,64], index: 1, kind: input, shape index: {}]   ;;  %s1830_s2 = inlined_call_operand.vmem [shape: f32[64,256], index: 2, kind: input, shape index: {}]   ;;  %s1831_s3 = inlined_call_operand.vmem [shape: f32[32,128], index: 3, kind: input, shape index: {}]   ;;  %s1832_s4 = inlined_call_operand.vmem [shape: f32[8,256], index: 4, kind: input, shape index: {}]   ;;  %s1833_s5 = inlined_call_operand.vmem [shape: f32[2,1], index: 5, kind: output, shape index: {}]  }
   0x1   :  { %s17_s20 = sshll.u32 %s1828_s0, 4  ;;  %s18_s20 = int_to_ptr.vmem [resolvable:$true] %s17_s20 }
   0x2   :  { %s1440_s21 = scalar_lea.vmem %s18_s20, 32  ;;  %p1445_p1 = scmp.lt.s32.totalorder %s18_s20, %s18_s20 }
   0x3   :  { %p1441_p0 = scmp.ne.s32.totalorder %s18_s20, %s1440_s21  ;;  %p1446_p2 = scmp.lt.s32.totalorder %s1440_s21, %s1440_s21 }
   0x5   :  { %p1447_p3 = por %p1446_p2, %p1445_p1 }
   0x7   :  { %p1448_p4 = pnand %p1447_p3, %p1441_p0 }
   0x9   :  { %1451 = shalt.err (!%p1448_p4)
}
   0xa   :  { %s1454_s22 = smov [#allocation3]  }
   0xb   :  { %20 = dma.vmem_to_smem %s18_s20, 32, %s1454_s22, [#allocation4]  }
   0xc   :  { %1452 = dma.done.wait [#allocation4], 32  }
   0xd   :  { %1453 = vsyncadd [#allocation4], 4294967264 }
   0xe   :  { %32 = sfence }
   0xf   :  { %v118_v0 = vld [vmem:[%s1830_s2 + $0x8] sm:$0xff]  ;;  %v120_v1 = vld [vmem:[%s1830_s2 + $0x18] sm:$0xff]  ;;  %v117_v2 = vld [vmem:[%s1830_s2] sm:$0xff]  ;;  %vm33_vm0 = vcmask 523264   ;;  %v1455_v7 = vmov 0.0|0.0   ;;  %v1456_v8 = vmov 0.0   ;;  %v133_v35 = vlaneseq }
  0x10   :  { %v1315_v3 = vpack.c.bf16 %v120_v1, %v118_v0  ;;  %v119_v4 = vld [vmem:[%s1830_s2 + $0x10] sm:$0xff]  ;;  %v122_v5 = vld [vmem:[%s1830_s2 + $0x28] sm:$0xff]  ;;  %v124_v6 = vld [vmem:[%s1830_s2 + $0x38] sm:$0xff]  ;;  %1331 = vmatprep.subr.bf16.mxu0 %v1455_v7  ;;  %229 = vmatprep.mubr.f32.mxu1 %v1456_v8  ;;  %34 = vst.msk [vmem:[#allocation2] sm:$0xff] %vm33_vm0, %v1456_v8  ;;  %s1516_s9 = sld [smem:[#allocation3]]  ;;  %vm1457_vm1 = vmmov 0  }
  0x11   :  { %35 = vst.msk [vmem:[#allocation2 + $0x8] sm:$0xff] %vm33_vm0, %v1456_v8  ;;  %36 = vst.msk [vmem:[#allocation2 + $0x10] sm:$0xff] %vm33_vm0, %v1456_v8  ;;  %v1317_v9 = vpack.c.bf16 %v119_v4, %v117_v2  ;;  %v1319_v10 = vpack.c.bf16 %v124_v6, %v122_v5  ;;  %v121_v11 = vld [vmem:[%s1830_s2 + $0x20] sm:$0xff]  ;;  %v123_v12 = vld [vmem:[%s1830_s2 + $0x30] sm:$0xff]  ;;  %s1541_s16 = sld [smem:[#allocation3 + $0x80]]  ;;  %1235 = vmatprep.mubr.msk.f32.mxu0 %vm1457_vm1, %v1456_v8  ;;  %vm45_vm2 = vcmask 516096  }
  0x12   :  { %37 = vst.msk [vmem:[#allocation2 + $0x18] sm:$0xff] %vm33_vm0, %v1456_v8  ;;  %38 = vst.msk [vmem:[#allocation2 + $0x20] sm:$0xff] %vm33_vm0, %v1456_v8  ;;  %v126_v13 = vld [vmem:[%s1830_s2 + $0x48] sm:$0xff]  ;;  %1316 = vmatprep.subr.bf16.mxu1 %v1315_v3  ;;  %v128_v14 = vld [vmem:[%s1830_s2 + $0x58] sm:$0xff]  ;;  %v1321_v15 = vpack.c.bf16 %v123_v12, %v121_v11  ;;  %v1609_v36 = vshrl.u32 %v133_v35, 7  ;;  %v272_v42 = vand.u32 127, %v133_v35 }
  0x13   :  { %39 = vst.msk [vmem:[#allocation2 + $0x28] sm:$0xff] %vm33_vm0, %v1456_v8  ;;  %40 = vst.msk [vmem:[#allocation2 + $0x30] sm:$0xff] %vm33_vm0, %v1456_v8  ;;  %1318 = vmatpush1.bf16.msra.mxu1 %v1317_v9  ;;  %v276_v16 = vld [vmem:[%s1831_s3] sm:$0xff]  ;;  %v277_v17 = vld [vmem:[%s1831_s3 + $0x8] sm:$0xff]  ;;  %v1323_v18 = vpack.c.bf16 %v128_v14, %v126_v13  ;;  %s1459_s20 = smov 32   ;;  %s1157_s21 = sld [smem:[#allocation3 + $0x1]] }
  0x14   :  { %41 = vst.msk [vmem:[#allocation2 + $0x38] sm:$0xff] %vm33_vm0, %v1456_v8  ;;  %1320 = vmatprep.subr.bf16.mxu1 %v1319_v10  ;;  %v125_v19 = vld [vmem:[%s1830_s2 + $0x40] sm:$0xff]  ;;  %v127_v20 = vld [vmem:[%s1830_s2 + $0x50] sm:$0xff]  ;;  %v1560_v21 = vpack.c.bf16 %v277_v17, %v276_v16  ;;  %v130_v22 = vld [vmem:[%s1830_s2 + $0x68] sm:$0xff]  ;;  %v135_v37 = vsub.s32 0, %v1609_v36  ;;  %vm273_vm3 = vcmp.ge.s32.totalorder %v272_v42, 64 }
  0x15   :  { %v132_v23 = vld [vmem:[%s1830_s2 + $0x78] sm:$0xff]  ;;  %v278_v24 = vld [vmem:[%s1831_s3 + $0x10] sm:$0xff]  ;;  %v1325_v27 = vpack.c.bf16 %v127_v20, %v125_v19  ;;  %v129_v30 = vld [vmem:[%s1830_s2 + $0x60] sm:$0xff]  ;;  %vm274_vm4 = vcmp.lt.s32.totalorder %v272_v42, 96  ;;  %s1158_s22 = sld [smem:[#allocation3 + $0x81]]  ;;  %vm280_vm6 = vcmask 261120  }
  0x16   :  { %v279_v25 = vld [vmem:[%s1831_s3 + $0x18] sm:$0xff]  ;;  %1333 = vmatpush3.bf16.msra.mxu0 %v1560_v21  ;;  %s43_s12 = scalar_lea.vmem %s1829_s1, %s1516_s9  ;;  %v1327_v29 = vpack.c.bf16 %v132_v23, %v130_v22  ;;  %v131_v31 = vld [vmem:[%s1830_s2 + $0x70] sm:$0xff]  ;;  %v1615_v38 = vld [vmem:[%s1832_s4] sm:$0xff]  ;;  %s1159_s28 = sld [smem:[#allocation3 + $0x2]]  ;;  %vm1133_vm7 = vcmask 1024  }
  0x17   :  { %v1575_v26 = vpack.c.bf16 %v279_v25, %v278_v24  ;;  %1322 = vmatpush1.bf16.msra.mxu1 %v1321_v15  ;;  %1334 = vmatprep.subr.bf16.mxu0 %v1455_v7  ;;  %v44_v28 = vld [vmem:[%s43_s12] sm:$0x1]  ;;  %s48_s15 = scalar_lea.vmem %s1829_s1, %s1541_s16  ;;  %v1329_v33 = vpack.c.bf16 %v131_v31, %v129_v30  ;;  %v1620_v41 = vrot.slane %v1615_v38, %v135_v37  ;;  %vm1623_vm5 = vmand %vm273_vm3, %vm274_vm4  ;;  %s1458_s16 = smov 64  }
  0x18   :  { %1324 = vmatprep.subr.bf16.mxu1 %v1323_v18  ;;  %46 = vst.msk [vmem:[#allocation2] sm:$0x1] %vm45_vm2, %v44_v28  ;;  %v49_v32 = vld [vmem:[%s48_s15] sm:$0x1]  ;;  %s1160_s29 = sld [smem:[#allocation3 + $0x82]]  ;;  %s1161_s12 = sld [smem:[#allocation3 + $0x3]] }
  0x19   :  { %50 = vst.msk [vmem:[#allocation2 + $0x1] sm:$0x1] %vm45_vm2, %v49_v32  ;;  %s52_s25 = scalar_lea.vmem %s1829_s1, %s1157_s21  ;;  %s1162_s13 = sld [smem:[#allocation3 + $0x83]] }
  0x1a   :  { %1336 = vmatpush3.bf16.msra.mxu0 %v1575_v26  ;;  %v53_v59 = vld [vmem:[%s52_s25] sm:$0x1]  ;;  %s1163_s2 = sld [smem:[#allocation3 + $0x4]]  ;;  %s1165_s0 = sld [smem:[#allocation3 + $0x5]] }
  0x1b   :  { %1326 = vmatpush1.bf16.msra.mxu1 %v1325_v27  ;;  %1337 = vmatprep.subr.bf16.mxu0 %v1455_v7  ;;  %s56_s27 = scalar_lea.vmem %s1829_s1, %s1158_s22  ;;  %54 = vst.msk [vmem:[#allocation2 + $0x8] sm:$0x1] %vm45_vm2, %v53_v59  ;;  %s1164_s9 = sld [smem:[#allocation3 + $0x84]] }
  0x1c   :  { %1328 = vmatprep.subr.bf16.mxu1 %v1327_v29  ;;  %v57_v60 = vld [vmem:[%s56_s27] sm:$0x1]  ;;  %s60_s7 = scalar_lea.vmem %s1829_s1, %s1159_s28  ;;  %s1166_s27 = sld [smem:[#allocation3 + $0x85]] }
  0x1d   :  { %1236 = vmatmul.mubr.f32.vlgmr.msra.gmra.mrb[0].mxu0 %v1456_v8  ;;  %58 = vst.msk [vmem:[#allocation2 + $0x9] sm:$0x1] %vm45_vm2, %v57_v60  ;;  %v61_v22 = vld [vmem:[%s60_s7] sm:$0x1]  ;;  %s1167_s10 = sld [smem:[#allocation3 + $0x6]]  ;;  %s1169_s18 = sld [smem:[#allocation3 + $0x7]] }
  0x1e   :  { %1339 = vmatpush3.bf16.msra.mxu0 %v1560_v21  ;;  %1246 = vmatprep.mubr.msk.f32.mxu0 %vm1457_vm1, %v1456_v8  ;;  %s64_s11 = scalar_lea.vmem %s1829_s1, %s1160_s29  ;;  %62 = vst.msk [vmem:[#allocation2 + $0x10] sm:$0x1] %vm45_vm2, %v61_v22  ;;  %s68_s3 = scalar_lea.vmem %s1829_s1, %s1161_s12 }
  0x1f   :  { %1330 = vmatpush1.bf16.msra.mxu1 %v1329_v33  ;;  %1340 = vmatprep.subr.bf16.mxu0 %v1455_v7  ;;  %v65_v23 = vld [vmem:[%s64_s11] sm:$0x1]  ;;  %s72_s19 = scalar_lea.vmem %s1829_s1, %s1162_s13  ;;  %s1168_s11 = sld [smem:[#allocation3 + $0x86]] }
  0x20   :  { %v109_v34 = vld [vmem:[#allocation2] sm:$0xff]  ;;  %1373 = vmatprep.subr.bf16.mxu1 %v1455_v7  ;;  %66 = vst.msk [vmem:[#allocation2 + $0x11] sm:$0x1] %vm45_vm2, %v65_v23  ;;  %s76_s23 = scalar_lea.vmem %s1829_s1, %s1163_s2  ;;  %s84_s30 = scalar_lea.vmem %s1829_s1, %s1165_s0 }
  0x21   :  { %s80_s26 = scalar_lea.vmem %s1829_s1, %s1164_s9 }
  0x22   :  { %1171 = vmatmul.mubr.msk.f32.vlgmr.msra.gmra.mrb[0].mxu1 %vm33_vm0, %v109_v34  ;;  %1342 = vmatpush3.bf16.msra.mxu0 %v1575_v26  ;;  %s88_s8 = scalar_lea.vmem %s1829_s1, %s1166_s27 }
  0x23   :  { %234 = vmatprep.mubr.f32.mxu1 %v1456_v8  ;;  %1343 = vmatprep.subr.bf16.mxu0 %v1455_v7  ;;  %s92_s14 = scalar_lea.vmem %s1829_s1, %s1167_s10  ;;  %s100_s21 = scalar_lea.vmem %s1829_s1, %s1169_s18 }
  0x24   :  { %1375 = vmatpush3.bf16.msra.mxu1 %v1560_v21  ;;  %v110_v62 = vld [vmem:[#allocation2 + $0x8] sm:$0xff] }
  0x25   :  { %1376 = vmatprep.subr.bf16.mxu1 %v1455_v7  ;;  %s96_s17 = scalar_lea.vmem %s1829_s1, %s1168_s11 }
  0x26   :  { %1172 = vmatmul.mubr.msk.f32.gmra.mrb[2].mxu1 %vm33_vm0, %v110_v62 }
  0x27   :  { %239 = vmatprep.mubr.f32.mxu1 %v1456_v8  ;;  %v111_v25 = vld [vmem:[#allocation2 + $0x10] sm:$0xff] }
  0x28   :  { %1378 = vmatpush3.bf16.msra.mxu1 %v1575_v26 }
  0x2a   :  { %1173 = vmatmul.mubr.msk.f32.gmra.mrb[4].mxu1 %vm33_vm0, %v111_v25 }
  0x2b   :  { %244 = vmatprep.mubr.f32.mxu1 %v1456_v8 }
  0xf0   :  { %v350_v39 = vpop.f32.mrb[0].mxu0 }
  0xf1   :  { %v1237_v40 = vpop.f32.mrb[1].mxu0 }
  0xf5   :  { %v231_v43 = vpop.f32.mrb[0].mxu1 }
  0xf6   :  { %v232_v44 = vadd.f32 %v231_v43, %v1620_v41  ;;  %v233_v45 = vpop.f32.mrb[1].mxu1 }
  0xf8   :  { %v354_v46 = vadd.f32 %v350_v39, %v232_v44 }
  0xf9   :  { %v236_v1 = vpop.f32.mrb[2].mxu1 }
  0xfa   :  { %v355_v48 = vmul.f32 0.5, %v354_v46  ;;  %v238_v2 = vpop.f32.mrb[3].mxu1  ;;  %v237_v4 = vadd.f32 %v236_v1, %v1620_v41 }
  0xfc   :  { %v356_v49 = vsel %vm1623_vm5, %v354_v46, %v355_v48 }
  0xfd   :  { %1400 = vtanh.f32 %v356_v49  ;;  %v241_v29 = vpop.f32.mrb[4].mxu1 }
  0xfe   :  { %v243_v30 = vpop.f32.mrb[5].mxu1  ;;  %v242_v32 = vadd.f32 %v241_v29, %v1620_v41 }
 0x107   :  { %v1401_v50 = vpop.eup %1400 }
 0x108   :  { %v358_v51 = vadd.f32 1.0, %v1401_v50 }
 0x10a   :  { %v359_v52 = vmul.f32 0.5, %v358_v51 }
 0x10c   :  { %v360_v53 = vsel %vm1623_vm5, %v1401_v50, %v359_v52  ;;  %v69_v52 = vld [vmem:[%s68_s3] sm:$0x1] }
 0x10d   :  { %363 = vrot.lane.b32.xlu0 %v360_v53, %s1458_s16  ;;  %v361_v56 = vmul.f32 0.0, %v360_v53  ;;  %70 = vst.msk [vmem:[#allocation2 + $0x18] sm:$0x1] %vm45_vm2, %v69_v52 }
 0x17f   :  { %v364_v54 = vpop.permute.xlu0 %363 }
 0x180   :  { %v366_v55 = vmul.f32 %v364_v54, %v360_v53 }
 0x182   :  { %368 = vrot.lane.b32.xlu0 %v366_v55, %s1459_s20 }
 0x1f4   :  { %v369_v57 = vpop.permute.xlu0 %368 }
 0x1f5   :  { %v371_v58 = vadd.f32 %v369_v57, %v361_v56 }
 0x1f7   :  { %1402 = vtanh.f32 %v371_v58 }
 0x201   :  { %v1403_v61 = vpop.eup %1402 }
 0x202   :  { %374 = vrot.lane.b32.xlu1 %v1403_v61, %s1458_s16 }
 0x274   :  { %v375_v63 = vpop.permute.xlu1 %374 }
 0x275   :  { %v377_v0 = vmul.f32 %v375_v63, %v360_v53  ;;  %v73_v53 = vld [vmem:[%s72_s19] sm:$0x1]  ;;  %s1170_s19 = sld [smem:[#allocation3 + $0x87]] }
 0x276   :  { %74 = vst.msk [vmem:[#allocation2 + $0x19] sm:$0x1] %vm45_vm2, %v73_v53 }
 0x277   :  { %379 = vrot.lane.b32.xlu1 %v377_v0, %s1459_s20 }
 0x27b   :  { %s104_s24 = scalar_lea.vmem %s1829_s1, %s1170_s19 }
 0x27d   :  { %v112_v55 = vld [vmem:[#allocation2 + $0x18] sm:$0xff] }
 0x27e   :  { %1174 = vmatmul.mubr.msk.f32.gmra.mrb[6].mxu1 %vm33_vm0, %v112_v55 }
 0x27f   :  { %249 = vmatprep.mubr.f32.mxu1 %v1456_v8 }
 0x2e9   :  { %v380_v3 = vpop.permute.xlu1 %379 }
 0x2ea   :  { %1247 = vmatmul.mubr.msk.f32.vlgmr.msra.gmra.mrb[2].mxu0 %vm280_vm6, %v380_v3 }
 0x2eb   :  { %1345 = vmatpush3.bf16.msra.mxu0 %v1560_v21  ;;  %1257 = vmatprep.mubr.msk.f32.mxu0 %vm1457_vm1, %v1456_v8 }
 0x2ec   :  { %1346 = vmatprep.subr.bf16.mxu0 %v1455_v7 }
 0x2ef   :  { %1348 = vmatpush3.bf16.msra.mxu0 %v1575_v26 }
 0x2f0   :  { %1349 = vmatprep.subr.bf16.mxu0 %v1455_v7 }
 0x3bd   :  { %v449_v5 = vpop.f32.mrb[2].mxu0 }
 0x3be   :  { %v453_v6 = vadd.f32 %v449_v5, %v237_v4  ;;  %v1248_v9 = vpop.f32.mrb[3].mxu0 }
 0x3c0   :  { %v454_v10 = vmul.f32 0.5, %v453_v6 }
 0x3c2   :  { %v455_v11 = vsel %vm1623_vm5, %v453_v6, %v454_v10 }
 0x3c3   :  { %1404 = vtanh.f32 %v455_v11 }
 0x3cd   :  { %v1405_v12 = vpop.eup %1404 }
 0x3ce   :  { %v457_v13 = vadd.f32 1.0, %v1405_v12 }
 0x3d0   :  { %v458_v14 = vmul.f32 0.5, %v457_v13 }
 0x3d2   :  { %v459_v15 = vsel %vm1623_vm5, %v1405_v12, %v458_v14  ;;  %v77_v14 = vld [vmem:[%s76_s23] sm:$0x1] }
 0x3d3   :  { %462 = vrot.lane.b32.xlu0 %v459_v15, %s1458_s16  ;;  %v460_v18 = vmul.f32 %v459_v15, %v371_v58  ;;  %v246_v58 = vpop.f32.mrb[6].mxu1  ;;  %78 = vst.msk [vmem:[#allocation2 + $0x20] sm:$0x1] %vm45_vm2, %v77_v14 }
 0x3d4   :  { %v248_v59 = vpop.f32.mrb[7].mxu1  ;;  %v247_v61 = vadd.f32 %v246_v58, %v1620_v41 }
 0x445   :  { %v463_v16 = vpop.permute.xlu0 %462 }
 0x446   :  { %v465_v17 = vmul.f32 %v463_v16, %v459_v15 }
 0x448   :  { %467 = vrot.lane.b32.xlu1 %v465_v17, %s1459_s20 }
 0x4ba   :  { %v468_v19 = vpop.permute.xlu1 %467 }
 0x4bb   :  { %v470_v20 = vadd.f32 %v468_v19, %v460_v18 }
 0x4bd   :  { %1406 = vtanh.f32 %v470_v20 }
 0x4c7   :  { %v1407_v24 = vpop.eup %1406 }
 0x4c8   :  { %473 = vrot.lane.b32.xlu0 %v1407_v24, %s1458_s16 }
 0x53a   :  { %v474_v27 = vpop.permute.xlu0 %473 }
 0x53b   :  { %v476_v28 = vmul.f32 %v474_v27, %v459_v15  ;;  %v81_v15 = vld [vmem:[%s80_s26] sm:$0x1] }
 0x53c   :  { %82 = vst.msk [vmem:[#allocation2 + $0x21] sm:$0x1] %vm45_vm2, %v81_v15 }
 0x53d   :  { %478 = vrot.lane.b32.xlu1 %v476_v28, %s1459_s20 }
 0x543   :  { %v113_v17 = vld [vmem:[#allocation2 + $0x20] sm:$0xff] }
 0x544   :  { %1175 = vmatmul.mubr.msk.f32.gmra.mrb[8].mxu1 %vm33_vm0, %v113_v17 }
 0x545   :  { %254 = vmatprep.mubr.f32.mxu1 %v1456_v8 }
 0x5af   :  { %v479_v31 = vpop.permute.xlu1 %478 }
 0x5b0   :  { %1258 = vmatmul.mubr.msk.f32.vlgmr.msra.gmra.mrb[4].mxu0 %vm280_vm6, %v479_v31 }
 0x5b1   :  { %1351 = vmatpush3.bf16.msra.mxu0 %v1560_v21  ;;  %1268 = vmatprep.mubr.msk.f32.mxu0 %vm1457_vm1, %v1456_v8 }
 0x5b2   :  { %1352 = vmatprep.subr.bf16.mxu0 %v1455_v7 }
 0x5b5   :  { %1354 = vmatpush3.bf16.msra.mxu0 %v1575_v26 }
 0x5b6   :  { %1355 = vmatprep.subr.bf16.mxu0 %v1455_v7 }
 0x683   :  { %v548_v33 = vpop.f32.mrb[4].mxu0 }
 0x684   :  { %v552_v34 = vadd.f32 %v548_v33, %v242_v32  ;;  %v1259_v35 = vpop.f32.mrb[5].mxu0 }
 0x686   :  { %v553_v39 = vmul.f32 0.5, %v552_v34 }
 0x688   :  { %v554_v40 = vsel %vm1623_vm5, %v552_v34, %v553_v39 }
 0x689   :  { %1408 = vtanh.f32 %v554_v40 }
 0x693   :  { %v1409_v42 = vpop.eup %1408 }
 0x694   :  { %v556_v43 = vadd.f32 1.0, %v1409_v42 }
 0x696   :  { %v557_v44 = vmul.f32 0.5, %v556_v43 }
 0x698   :  { %v558_v45 = vsel %vm1623_vm5, %v1409_v42, %v557_v44  ;;  %v85_v44 = vld [vmem:[%s84_s30] sm:$0x1] }
 0x699   :  { %561 = vrot.lane.b32.xlu0 %v558_v45, %s1458_s16  ;;  %v559_v49 = vmul.f32 %v558_v45, %v470_v20  ;;  %v251_v20 = vpop.f32.mrb[8].mxu1  ;;  %86 = vst.msk [vmem:[#allocation2 + $0x28] sm:$0x1] %vm45_vm2, %v85_v44 }
 0x69a   :  { %v253_v22 = vpop.f32.mrb[9].mxu1  ;;  %v252_v24 = vadd.f32 %v251_v20, %v1620_v41 }
 0x69b   :  { %v101_v22 = vld [vmem:[%s100_s21] sm:$0x1] }
 0x69c   :  { %102 = vst.msk [vmem:[#allocation2 + $0x38] sm:$0x1] %vm45_vm2, %v101_v22 }
 0x70b   :  { %v562_v46 = vpop.permute.xlu0 %561 }
 0x70c   :  { %v564_v48 = vmul.f32 %v562_v46, %v558_v45 }
 0x70e   :  { %566 = vrot.lane.b32.xlu1 %v564_v48, %s1459_s20 }
 0x780   :  { %v567_v50 = vpop.permute.xlu1 %566 }
 0x781   :  { %v569_v51 = vadd.f32 %v567_v50, %v559_v49 }
 0x783   :  { %1410 = vtanh.f32 %v569_v51 }
 0x78d   :  { %v1411_v54 = vpop.eup %1410 }
 0x78e   :  { %572 = vrot.lane.b32.xlu0 %v1411_v54, %s1458_s16 }
 0x800   :  { %v573_v56 = vpop.permute.xlu0 %572 }
 0x801   :  { %v575_v57 = vmul.f32 %v573_v56, %v558_v45  ;;  %v89_v45 = vld [vmem:[%s88_s8] sm:$0x1] }
 0x802   :  { %90 = vst.msk [vmem:[#allocation2 + $0x29] sm:$0x1] %vm45_vm2, %v89_v45 }
 0x803   :  { %577 = vrot.lane.b32.xlu1 %v575_v57, %s1459_s20 }
 0x809   :  { %v114_v48 = vld [vmem:[#allocation2 + $0x28] sm:$0xff] }
 0x80a   :  { %1176 = vmatmul.mubr.msk.f32.gmra.mrb[10].mxu1 %vm33_vm0, %v114_v48 }
 0x80b   :  { %259 = vmatprep.mubr.f32.mxu1 %v1456_v8 }
 0x875   :  { %v578_v60 = vpop.permute.xlu1 %577 }
 0x876   :  { %1269 = vmatmul.mubr.msk.f32.vlgmr.msra.gmra.mrb[6].mxu0 %vm280_vm6, %v578_v60 }
 0x877   :  { %1357 = vmatpush3.bf16.msra.mxu0 %v1560_v21  ;;  %1279 = vmatprep.mubr.msk.f32.mxu0 %vm1457_vm1, %v1456_v8 }
 0x878   :  { %1358 = vmatprep.subr.bf16.mxu0 %v1455_v7 }
 0x87b   :  { %1360 = vmatpush3.bf16.msra.mxu0 %v1575_v26 }
 0x87c   :  { %1361 = vmatprep.subr.bf16.mxu0 %v1455_v7 }
 0x949   :  { %v647_v62 = vpop.f32.mrb[6].mxu0 }
 0x94a   :  { %v651_v63 = vadd.f32 %v647_v62, %v247_v61  ;;  %v1270_v0 = vpop.f32.mrb[7].mxu0 }
 0x94c   :  { %v652_v1 = vmul.f32 0.5, %v651_v63 }
 0x94e   :  { %v653_v2 = vsel %vm1623_vm5, %v651_v63, %v652_v1 }
 0x94f   :  { %1412 = vtanh.f32 %v653_v2  ;;  %v93_v2 = vld [vmem:[%s92_s14] sm:$0x1] }
 0x950   :  { %94 = vst.msk [vmem:[#allocation2 + $0x30] sm:$0x1] %vm45_vm2, %v93_v2 }
 0x959   :  { %v1413_v3 = vpop.eup %1412 }
 0x95a   :  { %v655_v4 = vadd.f32 1.0, %v1413_v3 }
 0x95c   :  { %v656_v5 = vmul.f32 0.5, %v655_v4 }
 0x95e   :  { %v657_v6 = vsel %vm1623_vm5, %v1413_v3, %v656_v5  ;;  %v97_v3 = vld [vmem:[%s96_s17] sm:$0x1] }
 0x95f   :  { %660 = vrot.lane.b32.xlu0 %v657_v6, %s1458_s16  ;;  %v658_v11 = vmul.f32 %v657_v6, %v569_v51  ;;  %v256_v51 = vpop.f32.mrb[10].mxu1  ;;  %98 = vst.msk [vmem:[#allocation2 + $0x31] sm:$0x1] %vm45_vm2, %v97_v3 }
 0x960   :  { %v258_v52 = vpop.f32.mrb[11].mxu1  ;;  %v257_v54 = vadd.f32 %v256_v51, %v1620_v41 }
 0x966   :  { %v115_v5 = vld [vmem:[#allocation2 + $0x30] sm:$0xff] }
 0x967   :  { %1177 = vmatmul.mubr.msk.f32.gmra.mrb[12].mxu1 %vm33_vm0, %v115_v5 }
 0x968   :  { %264 = vmatprep.mubr.f32.mxu1 %v1456_v8 }
 0x9d1   :  { %v661_v9 = vpop.permute.xlu0 %660 }
 0x9d2   :  { %v663_v10 = vmul.f32 %v661_v9, %v657_v6 }
 0x9d4   :  { %665 = vrot.lane.b32.xlu1 %v663_v10, %s1459_s20 }
 0xa3a   :  { %v261_v10 = vpop.f32.mrb[12].mxu1 }
 0xa46   :  { %v666_v12 = vpop.permute.xlu1 %665 }
 0xa47   :  { %v668_v13 = vadd.f32 %v666_v12, %v658_v11  ;;  %v263_v11 = vpop.f32.mrb[13].mxu1 }
 0xa49   :  { %1414 = vtanh.f32 %v668_v13 }
 0xa53   :  { %v1415_v16 = vpop.eup %1414 }
 0xa54   :  { %671 = vrot.lane.b32.xlu0 %v1415_v16, %s1458_s16 }
 0xac6   :  { %v672_v18 = vpop.permute.xlu0 %671 }
 0xac7   :  { %v674_v19 = vmul.f32 %v672_v18, %v657_v6 }
 0xac9   :  { %676 = vrot.lane.b32.xlu1 %v674_v19, %s1459_s20 }
 0xb3b   :  { %v677_v23 = vpop.permute.xlu1 %676 }
 0xb3c   :  { %1280 = vmatmul.mubr.msk.f32.vlgmr.msra.gmra.mrb[8].mxu0 %vm280_vm6, %v677_v23  ;;  %v105_v23 = vld [vmem:[%s104_s24] sm:$0x1] }
 0xb3d   :  { %1363 = vmatpush3.bf16.msra.mxu0 %v1560_v21  ;;  %1290 = vmatprep.mubr.msk.f32.mxu0 %vm1457_vm1, %v1456_v8  ;;  %106 = vst.msk [vmem:[#allocation2 + $0x39] sm:$0x1] %vm45_vm2, %v105_v23 }
 0xb3e   :  { %1364 = vmatprep.subr.bf16.mxu0 %v1455_v7 }
 0xb41   :  { %1366 = vmatpush3.bf16.msra.mxu0 %v1575_v26 }
 0xb42   :  { %1367 = vmatprep.subr.bf16.mxu0 %v1455_v7 }
 0xc0f   :  { %v746_v25 = vpop.f32.mrb[8].mxu0 }
 0xc10   :  { %v750_v27 = vadd.f32 %v746_v25, %v252_v24  ;;  %v1281_v28 = vpop.f32.mrb[9].mxu0 }
 0xc12   :  { %v751_v29 = vmul.f32 0.5, %v750_v27 }
 0xc14   :  { %v752_v30 = vsel %vm1623_vm5, %v750_v27, %v751_v29  ;;  %v116_v27 = vld [vmem:[#allocation2 + $0x38] sm:$0xff] }
 0xc15   :  { %1416 = vtanh.f32 %v752_v30  ;;  %1178 = vmatmul.mubr.msk.f32.gmra.mrb[14].mxu1 %vm33_vm0, %v116_v27 }
 0xc16   :  { %1312 = vmatprep.mubr.msk.f32.mxu1 %vm1457_vm1, %v1456_v8 }
 0xc1f   :  { %v1417_v31 = vpop.eup %1416 }
 0xc20   :  { %v754_v32 = vadd.f32 1.0, %v1417_v31 }
 0xc22   :  { %v755_v33 = vmul.f32 0.5, %v754_v32 }
 0xc24   :  { %v756_v34 = vsel %vm1623_vm5, %v1417_v31, %v755_v33 }
 0xc25   :  { %759 = vrot.lane.b32.xlu0 %v756_v34, %s1458_s16  ;;  %v757_v40 = vmul.f32 %v756_v34, %v668_v13  ;;  %v262_v13 = vadd.f32 %v261_v10, %v1620_v41 }
 0xc97   :  { %v760_v35 = vpop.permute.xlu0 %759 }
 0xc98   :  { %v762_v39 = vmul.f32 %v760_v35, %v756_v34 }
 0xc9a   :  { %764 = vrot.lane.b32.xlu1 %v762_v39, %s1459_s20  ;;  %v108_v39 = vld [vmem:[%s1832_s4 + $0x8] sm:$0xff]  ;;  %s1460_s4 = smov 96  }
 0xce8   :  { %v266_v30 = vpop.f32.mrb[14].mxu1 }
 0xce9   :  { %v268_v31 = vpop.f32.mrb[15].mxu1 }
 0xd0c   :  { %v765_v42 = vpop.permute.xlu1 %764 }
 0xd0d   :  { %v767_v43 = vadd.f32 %v765_v42, %v757_v40 }
 0xd0f   :  { %1418 = vtanh.f32 %v767_v43 }
 0xd19   :  { %v1419_v46 = vpop.eup %1418 }
 0xd1a   :  { %770 = vrot.lane.b32.xlu0 %v1419_v46, %s1458_s16 }
 0xd8c   :  { %v771_v49 = vpop.permute.xlu0 %770 }
 0xd8d   :  { %v773_v50 = vmul.f32 %v771_v49, %v756_v34 }
 0xd8f   :  { %775 = vrot.lane.b32.xlu1 %v773_v50, %s1459_s20 }
 0xe01   :  { %v776_v53 = vpop.permute.xlu1 %775 }
 0xe02   :  { %1291 = vmatmul.mubr.msk.f32.vlgmr.msra.gmra.mrb[10].mxu0 %vm280_vm6, %v776_v53 }
 0xe03   :  { %1369 = vmatpush3.bf16.msra.mxu0 %v1560_v21  ;;  %1301 = vmatprep.mubr.msk.f32.mxu0 %vm1457_vm1, %v1456_v8  ;;  %v140_v8 = vrot.slane %v108_v39, %v135_v37 }
 0xe04   :  { %1370 = vmatprep.subr.bf16.mxu0 %v1455_v7 }
 0xe05   :  { %v269_v40 = vadd.f32 %v268_v31, %v140_v8 }
 0xe07   :  { %1372 = vmatpush3.bf16.msra.mxu0 %v1575_v26  ;;  %v1071_v42 = vmul.f32 0.5, %v269_v40 }
 0xed5   :  { %v845_v55 = vpop.f32.mrb[10].mxu0 }
 0xed6   :  { %v849_v56 = vadd.f32 %v845_v55, %v257_v54  ;;  %v1292_v57 = vpop.f32.mrb[11].mxu0 }
 0xed8   :  { %v850_v58 = vmul.f32 0.5, %v849_v56 }
 0xeda   :  { %v851_v59 = vsel %vm1623_vm5, %v849_v56, %v850_v58  ;;  %v1096_v56 = vsub.s32 1, %v1609_v36 }
 0xedb   :  { %1420 = vtanh.f32 %v851_v59  ;;  %v267_v59 = vadd.f32 %v266_v30, %v1620_v41 }
 0xedc   :  { %v1097_v58 = vrot.slane %v1615_v38, %v1096_v56 }
 0xee5   :  { %v1421_v60 = vpop.eup %1420 }
 0xee6   :  { %v853_v61 = vadd.f32 1.0, %v1421_v60 }
 0xee8   :  { %v854_v21 = vmul.f32 0.5, %v853_v61 }
 0xeea   :  { %v855_v62 = vsel %vm1623_vm5, %v1421_v60, %v854_v21 }
 0xeeb   :  { %858 = vrot.lane.b32.xlu0 %v855_v62, %s1458_s16  ;;  %v856_v63 = vmul.f32 %v855_v62, %v767_v43  ;;  %v1072_v43 = vsel %vm1623_vm5, %v269_v40, %v1071_v42 }
 0xf5d   :  { %v859_v7 = vpop.permute.xlu0 %858 }
 0xf5e   :  { %v861_v26 = vmul.f32 %v859_v7, %v855_v62 }
 0xf60   :  { %863 = vrot.lane.b32.xlu1 %v861_v26, %s1459_s20 }
 0xfd2   :  { %v864_v0 = vpop.permute.xlu1 %863 }
 0xfd3   :  { %v866_v1 = vadd.f32 %v864_v0, %v856_v63 }
 0xfd5   :  { %1422 = vtanh.f32 %v866_v1 }
 0xfdf   :  { %v1423_v4 = vpop.eup %1422 }
 0xfe0   :  { %869 = vrot.lane.b32.xlu0 %v1423_v4, %s1458_s16 }
0x1052   :  { %v870_v6 = vpop.permute.xlu0 %869 }
0x1053   :  { %v872_v9 = vmul.f32 %v870_v6, %v855_v62 }
0x1055   :  { %874 = vrot.lane.b32.xlu1 %v872_v9, %s1459_s20 }
0x10c7   :  { %v875_v12 = vpop.permute.xlu1 %874 }
0x10c8   :  { %1302 = vmatmul.mubr.msk.f32.vlgmr.msra.gmra.mrb[12].mxu0 %vm280_vm6, %v875_v12 }
0x119b   :  { %v944_v14 = vpop.f32.mrb[12].mxu0 }
0x119c   :  { %v948_v15 = vadd.f32 %v944_v14, %v262_v13  ;;  %v1303_v16 = vpop.f32.mrb[13].mxu0 }
0x119e   :  { %v949_v17 = vmul.f32 0.5, %v948_v15 }
0x11a0   :  { %v950_v18 = vsel %vm1623_vm5, %v948_v15, %v949_v17 }
0x11a1   :  { %1424 = vtanh.f32 %v950_v18 }
0x11ab   :  { %v1425_v19 = vpop.eup %1424 }
0x11ac   :  { %v952_v20 = vadd.f32 1.0, %v1425_v19 }
0x11ae   :  { %v953_v24 = vmul.f32 0.5, %v952_v20  ;;  %v1124_v20 = vsub.s32 2, %v1609_v36 }
0x11b0   :  { %v954_v25 = vsel %vm1623_vm5, %v1425_v19, %v953_v24  ;;  %v1125_v22 = vrot.slane %v1615_v38, %v1124_v20 }
0x11b1   :  { %957 = vrot.lane.b32.xlu0 %v954_v25, %s1458_s16  ;;  %v955_v32 = vmul.f32 %v954_v25, %v866_v1 }
0x1223   :  { %v958_v28 = vpop.permute.xlu0 %957 }
0x1224   :  { %v960_v29 = vmul.f32 %v958_v28, %v954_v25 }
0x1226   :  { %962 = vrot.lane.b32.xlu1 %v960_v29, %s1459_s20 }
0x1298   :  { %v963_v33 = vpop.permute.xlu1 %962 }
0x1299   :  { %v965_v34 = vadd.f32 %v963_v33, %v955_v32 }
0x129b   :  { %1426 = vtanh.f32 %v965_v34 }
0x129c   :  { %1428 = vtanh.f32 %v1072_v43 }
0x12a5   :  { %v1427_v35 = vpop.eup %1426 }
0x12a6   :  { %968 = vrot.lane.b32.xlu0 %v1427_v35, %s1458_s16  ;;  %v1429_v44 = vpop.eup %1428 }
0x12a7   :  { %v1074_v45 = vadd.f32 1.0, %v1429_v44 }
0x12a9   :  { %v1075_v48 = vmul.f32 0.5, %v1074_v45 }
0x12ab   :  { %v1076_v50 = vsel %vm1623_vm5, %v1429_v44, %v1075_v48 }
0x12ac   :  { %v1077_v53 = vmul.f32 0.0, %v1076_v50 }
0x1318   :  { %v969_v46 = vpop.permute.xlu0 %968 }
0x1319   :  { %v971_v49 = vmul.f32 %v969_v46, %v954_v25 }
0x131b   :  { %973 = vrot.lane.b32.xlu1 %v971_v49, %s1459_s20 }
0x131f   :  { %1079 = vrot.lane.b32.xlu1 %v1076_v50, %s1458_s16 }
0x138d   :  { %v974_v51 = vpop.permute.xlu1 %973 }
0x138e   :  { %1313 = vmatmul.mubr.msk.f32.vlgmr.msra.gmra.mrb[16].mxu1 %vm280_vm6, %v974_v51 }
0x1391   :  { %v1080_v37 = vpop.permute.xlu1 %1079 }
0x1392   :  { %v1082_v52 = vmul.f32 %v1080_v37, %v1076_v50 }
0x1394   :  { %1084 = vrot.lane.b32.xlu1 %v1082_v52, %s1459_s20 }
0x1406   :  { %v1085_v54 = vpop.permute.xlu1 %1084 }
0x1407   :  { %v1087_v55 = vadd.f32 %v1085_v54, %v1077_v53 }
0x1409   :  { %1430 = vtanh.f32 %v1087_v55 }
0x1413   :  { %v1431_v57 = vpop.eup %1430 }
0x1414   :  { %1090 = vrot.lane.b32.xlu1 %v1431_v57, %s1458_s16 }
0x1418   :  { %1110 = vrot.lane.b32.xlu1 %v1097_v58, %s1458_s16 }
0x1461   :  { %v1043_v60 = vpop.f32.mrb[16].mxu1 }
0x1462   :  { %v1047_v61 = vadd.f32 %v1043_v60, %v267_v59  ;;  %v1314_v21 = vpop.f32.mrb[17].mxu1 }
0x1464   :  { %v1048_v62 = vmul.f32 0.5, %v1047_v61 }
0x1466   :  { %v1049_v7 = vsel %vm1623_vm5, %v1047_v61, %v1048_v62 }
0x1467   :  { %1432 = vtanh.f32 %v1049_v7 }
0x1471   :  { %v1433_v26 = vpop.eup %1432 }
0x1472   :  { %v1051_v63 = vadd.f32 1.0, %v1433_v26 }
0x1474   :  { %v1052_v0 = vmul.f32 0.5, %v1051_v63 }
0x1476   :  { %v1053_v1 = vsel %vm1623_vm5, %v1433_v26, %v1052_v0 }
0x1477   :  { %1056 = vrot.lane.b32.xlu0 %v1053_v1, %s1458_s16  ;;  %v1054_v11 = vmul.f32 %v1053_v1, %v965_v34 }
0x1486   :  { %v1091_v2 = vpop.permute.xlu1 %1090 }
0x1487   :  { %v1093_v3 = vmul.f32 %v1091_v2, %v1076_v50 }
0x148a   :  { %v1111_v4 = vpop.permute.xlu1 %1110 }
0x148b   :  { %v1113_v41 = vmul.f32 %v1111_v4, %v1093_v3 }
0x148d   :  { %1115 = vrot.lane.b32.xlu1 %v1113_v41, %s1459_s20 }
0x14e9   :  { %v1057_v5 = vpop.permute.xlu0 %1056 }
0x14ea   :  { %v1059_v6 = vmul.f32 %v1057_v5, %v1053_v1 }
0x14ec   :  { %1061 = vrot.lane.b32.xlu0 %v1059_v6, %s1459_s20 }
0x14ff   :  { %v1116_v9 = vpop.permute.xlu1 %1115 }
0x1500   :  { %v1118_v10 = vsel %vm280_vm6, %v1116_v9, 0.0 }
0x1501   :  { %1119 = vadd.xlane.f32.xlu1 %v1118_v10 }
0x155e   :  { %v1062_v12 = vpop.permute.xlu0 %1061 }
0x155f   :  { %v1064_v47 = vadd.f32 %v1062_v12, %v1054_v11 }
0x1561   :  { %1434 = vtanh.f32 %v1064_v47 }
0x156b   :  { %v1435_v13 = vpop.eup %1434 }
0x156c   :  { %1067 = vrot.lane.b32.xlu0 %v1435_v13, %s1458_s16 }
0x1570   :  { %1099 = vrot.lane.b32.xlu0 %v1097_v58, %s1460_s4 }
0x158e   :  { %v1120_v23 = vpop.xlane.xlu1 %1119 }
0x15de   :  { %v1068_v14 = vpop.permute.xlu0 %1067 }
0x15df   :  { %v1070_v15 = vmul.f32 %v1068_v14, %v1053_v1 }
0x15e2   :  { %v1100_v16 = vpop.permute.xlu0 %1099 }
0x15e3   :  { %v1102_v17 = vmul.f32 %v1100_v16, %v1070_v15 }
0x15e5   :  { %1104 = vrot.lane.b32.xlu0 %v1102_v17, %s1459_s20 }
0x1657   :  { %v1105_v18 = vpop.permute.xlu0 %1104 }
0x1658   :  { %v1107_v19 = vsel %vm280_vm6, %v1105_v18, 0.0 }
0x1659   :  { %1108 = vadd.xlane.f32.xlu0 %v1107_v19 }
0x16e6   :  { %v1109_v24 = vpop.xlane.xlu0 %1108 }
0x16e7   :  { %v1121_v25 = vadd.f32 %v1120_v23, %v1109_v24 }
0x16e9   :  { %v1126_v27 = vadd.f32 %v1125_v22, %v1121_v25 }
0x16eb   :  { %v1186_v28 = vmul.f32 -1.442695, %v1126_v27 }
0x16ed   :  { %1436 = vpow2.f32 %v1186_v28 }
0x16f7   :  { %v1437_v29 = vpop.eup %1436 }
0x16f8   :  { %v1130_v30 = vadd.f32 1.0, %v1437_v29 }
0x16fa   :  { %1438 = vrcp.f32 %v1130_v30 }
0x1704   :  { %v1439_v31 = vpop.eup %1438 }
0x1705   :  { %1134 = vst.msk [vmem:[%s1833_s5] sm:$0x3] %vm1133_vm7, %v1439_v31 }
0x1706   :  { %1139 = vsyncpa [#allocation4], 1 }

</bundles_post_ra>
